<compile_context>
chip_gen: v7x
topology: tpu7x:2x2x1
jax: 0.10.0
libtpu: 0.0.40
codegen_flags: <defaults>
</compile_context>

<pallas_src>
import jax
import jax.numpy as jnp
from jax.experimental import pallas as pl
from jax.experimental.pallas import tpu as pltpu


def _round_up(n, m):
    return ((n + m - 1) // m) * m


def mlp_kernel(x_ref, w1_ref, b1_ref, w2_ref, b2_ref, w3_ref, b3_ref, o_ref):
    """Fused linear1 -> ReLU -> linear2 -> ReLU -> linear3 for one batch tile.

    x_ref : (TB, D_in)        f32  (cast to bf16 in-kernel)
    w1_ref: (D_in, Hp)        bf16     b1_ref: (1, Hp) f32
    w2_ref: (Hp, Hp)          bf16     b2_ref: (1, Hp) f32
    w3_ref: (1, Hp)           f32      b3_ref: (1, 1)  f32  (SMEM scalar)
    o_ref : (1, TB//128, 128) f32  (lane-packed: o[0, g, l] = y[g*128 + l])
    """
    # bf16 cast on the VPU, hidden under the x DMA (review item 1).
    x = x_ref[...].astype(jnp.bfloat16)                                     # (TB, D)
    h1 = jnp.dot(x, w1_ref[...], preferred_element_type=jnp.float32) + b1_ref[...]
    h1 = jnp.maximum(h1, 0.0).astype(jnp.bfloat16)                          # (TB, Hp)
    h2 = jnp.dot(h1, w2_ref[...], preferred_element_type=jnp.float32) + b2_ref[...]
    h2 = jnp.maximum(h2, 0.0)                                               # (TB, Hp) f32

    # Final (N=1) layer on the VPU/XLU instead of a 1-column MXU matmul.
    y = jnp.sum(h2 * w3_ref[...], axis=-1, keepdims=True) + b3_ref[0, 0]    # (TB, 1)

    # Lane-pack the per-row scalars (review item 2): out[0, g, l] = y[g*128+l].
    # Diagonal mask + sublane reduction: only elementwise selects and an
    # axis-0 sum, all cheap and hidden under the x-stream DMA.
    rows = jax.lax.broadcasted_iota(jnp.int32, (128, 128), 0)
    cols = jax.lax.broadcasted_iota(jnp.int32, (128, 128), 1)
    diag = rows == cols
    n_groups = o_ref.shape[1]                       # TB // 128, static
    for g in range(n_groups):                       # static unroll, <= 8 groups
        y_g = y[g * 128:(g + 1) * 128, :]                                   # (128, 1)
        o_ref[0, g] = jnp.sum(jnp.where(diag, y_g, 0.0), axis=0)            # (128,)


def prepare_params(params, grayscale=False):
    """One-time parameter prep (hoisted out of the forward path).

    Folds the grayscale channel-sum into w1 ((x0+x1) @ w1 == x_flat @ [w1;w1]),
    zero-pads the hidden dim to a 128-lane multiple (exact numerics) and casts
    the two large weight matrices to bf16 for the MXU.
    """
    w1, b1, w2, b2, w3, b3 = params
    H = w1.shape[1]
    if grayscale:
        w1 = jnp.concatenate([w1, w1], axis=0)              # (392, H)
    d_in = w1.shape[0]

    Hp = _round_up(H, 128)
    w1p = jnp.zeros((d_in, Hp), jnp.float32).at[:, :H].set(w1)
    b1p = jnp.zeros((1, Hp), jnp.float32).at[:, :H].set(b1.reshape(1, H))
    w2p = jnp.zeros((Hp, Hp), jnp.float32).at[:H, :H].set(w2)
    b2p = jnp.zeros((1, Hp), jnp.float32).at[:, :H].set(b2.reshape(1, H))
    w3p = jnp.zeros((1, Hp), jnp.float32).at[:, :H].set(w3.reshape(1, H))
    b3p = b3.reshape(1, 1).astype(jnp.float32)

    return (w1p.astype(jnp.bfloat16), b1p, w2p.astype(jnp.bfloat16), b2p, w3p, b3p)


def mlp_forward(inputs, prepared_params, block_b=1024):
    """inputs: (B, 2, 14, 14) float32 (NCHW, like the PyTorch module)."""
    w1_bf, b1p, w2_bf, b2p, w3p, b3p = prepared_params
    B = inputs.shape[0]
    d_in, Hp = w1_bf.shape

    # Raw flat view; no pad / cast pass over the dominant x stream.
    x = inputs.reshape(B, d_in)

    # Batch tile: multiple of 128 (for the lane-packed output), at most
    # block_b, and at most ceil(B/2) rounded up so v7x's two TensorCores both
    # get grid steps ("parallel" axis) whenever there is enough work to split.
    TB = max(128, min(_round_up(block_b, 128), _round_up((B + 1) // 2, 128)))
    if B < TB:
        # Tiny batches only: cheap pad so the single block is fully in-bounds.
        x = jnp.pad(x, ((0, TB - B), (0, 0)))
    n_blocks = pl.cdiv(B, TB)
    n_groups = TB // 128

    out = pl.pallas_call(
        mlp_kernel,
        out_shape=jax.ShapeDtypeStruct((n_blocks, n_groups, 128), jnp.float32),
        grid=(n_blocks,),
        in_specs=[
            pl.BlockSpec((TB, d_in), lambda i: (i, 0)),              # x (streamed)
            pl.BlockSpec((d_in, Hp), lambda i: (0, 0)),              # w1 (resident)
            pl.BlockSpec((1, Hp), lambda i: (0, 0)),                 # b1 (resident)
            pl.BlockSpec((Hp, Hp), lambda i: (0, 0)),                # w2 (resident)
            pl.BlockSpec((1, Hp), lambda i: (0, 0)),                 # b2 (resident)
            pl.BlockSpec((1, Hp), lambda i: (0, 0)),                 # w3 (resident)
            pl.BlockSpec((1, 1), lambda i: (0, 0),
                         memory_space=pltpu.SMEM),                   # b3 scalar
        ],
        out_specs=pl.BlockSpec((1, n_groups, 128), lambda i: (i, 0, 0)),
        compiler_params=pltpu.CompilerParams(
            dimension_semantics=("parallel",),       # megacore on v7x
            vmem_limit_bytes=32 * 1024 * 1024,       # safe on v5e/v6e/v7x
        ),
    )(x, w1_bf, b1p, w2_bf, b2p, w3p, b3p)

    # (n_blocks, TB//128, 128) is batch row-major; rows >= B (from ragged /
    # padded blocks) are garbage and sliced off here.
    return out.reshape(n_blocks * TB, 1)[:B]


def init_params(key, hidden_dim, grayscale=False):
    """Deterministic Xavier-normal weights, zero biases (as in the module)."""
    d_in = 14 * 14 if grayscale else 2 * 14 * 14

    def xavier_normal(k, fan_in, fan_out):
        std = (2.0 / (fan_in + fan_out)) ** 0.5
        # torch weight is (out, in); we store the transpose (in, out) for x @ W.
        return (jax.random.normal(k, (fan_out, fan_in), jnp.float32) * std).T

    k1, k2, k3 = jax.random.split(key, 3)
    w1 = xavier_normal(k1, d_in, hidden_dim)          # (d_in, H)
    b1 = jnp.zeros((1, hidden_dim), jnp.float32)
    w2 = xavier_normal(k2, hidden_dim, hidden_dim)    # (H, H)
    b2 = jnp.zeros((1, hidden_dim), jnp.float32)
    w3 = xavier_normal(k3, hidden_dim, 1)             # (H, 1)
    b3 = jnp.zeros((1, 1), jnp.float32)
    return (w1, b1, w2, b2, w3, b3)


if __name__ == "__main__":
    key = jax.random.PRNGKey(0)
    k_in, k_p1, k_p2 = jax.random.split(key, 3)

    B, hidden_dim = 2, 32
    inputs = jax.random.normal(k_in, (B, 2, 14, 14), jnp.float32)  # NCHW colored-MNIST

    # ---- colored path (grayscale=False) ----
    params = init_params(k_p1, hidden_dim, grayscale=False)
    prepped = prepare_params(params, grayscale=False)      # one-time prep
    out = jax.block_until_ready(mlp_forward(inputs, prepped))
    assert out.shape == (B, 1)

    w1, b1, w2, b2, w3, b3 = params
    x = inputs.reshape(B, 2 * 14 * 14)
    h1 = jnp.maximum(x @ w1 + b1, 0.0)
    h2 = jnp.maximum(h1 @ w2 + b2, 0.0)
    ref = h2 @ w3 + b3
    # bf16 weight/activation stream -> compare against the f32 reference loosely.
    assert jnp.allclose(out, ref, atol=5e-2, rtol=5e-2), float(jnp.max(jnp.abs(out - ref)))

    # ---- grayscale path (channel-sum folded into w1 at prep time) ----
    params_g = init_params(k_p2, hidden_dim, grayscale=True)
    prepped_g = prepare_params(params_g, grayscale=True)
    out_g = jax.block_until_ready(mlp_forward(inputs, prepped_g))
    assert out_g.shape == (B, 1)

    w1g, b1g, w2g, b2g, w3g, b3g = params_g
    xg = inputs.reshape(B, 2, 14 * 14).sum(axis=1)
    h1g = jnp.maximum(xg @ w1g + b1g, 0.0)
    h2g = jnp.maximum(h1g @ w2g + b2g, 0.0)
    ref_g = h2g @ w3g + b3g
    assert jnp.allclose(out_g, ref_g, atol=5e-2, rtol=5e-2), float(jnp.max(jnp.abs(out_g - ref_g)))

    print("KERNEL_OK")
</pallas_src>

<mosaic_0001>
module attributes {stable_mosaic.version = 11 : i64} {
  func.func @mlp_kernel(%arg0: i32, %arg1: memref<128x392xf32, #tpu.memory_space<vmem>>, %arg2: memref<392x128xbf16, #tpu.memory_space<vmem>>, %arg3: memref<1x128xf32, #tpu.memory_space<vmem>>, %arg4: memref<128x128xbf16, #tpu.memory_space<vmem>>, %arg5: memref<1x128xf32, #tpu.memory_space<vmem>>, %arg6: memref<1x128xf32, #tpu.memory_space<vmem>>, %arg7: memref<1x1xf32, #tpu.memory_space<smem>>, %arg8: memref<1x1x128xf32, #tpu.memory_space<vmem>>) attributes {dimension_semantics = [#tpu.dimension_semantics<parallel>], iteration_bounds = array<i64: 1>, scalar_prefetch = 0 : i64, scratch_operands = 0 : i64, tpu.core_type = #tpu.core_type<tc>, window_params = [{transform_indices = @transform_0, window_bounds = array<i64: 128, 392>}, {pipeline_mode = #tpu.pipeline_mode<synchronous>, transform_indices = @transform_1, window_bounds = array<i64: 392, 128>}, {pipeline_mode = #tpu.pipeline_mode<synchronous>, transform_indices = @transform_2, window_bounds = array<i64: 1, 128>}, {pipeline_mode = #tpu.pipeline_mode<synchronous>, transform_indices = @transform_3, window_bounds = array<i64: 128, 128>}, {pipeline_mode = #tpu.pipeline_mode<synchronous>, transform_indices = @transform_4, window_bounds = array<i64: 1, 128>}, {pipeline_mode = #tpu.pipeline_mode<synchronous>, transform_indices = @transform_5, window_bounds = array<i64: 1, 128>}, {transform_indices = @transform_6, window_bounds = array<i64: 1, 1>}, {transform_indices = @transform_7, window_bounds = array<i64: 1, 1, 128>}]} {
    %c0 = arith.constant 0 : index
    %c0_0 = arith.constant 0 : index
    %0 = vector.load %arg1[%c0, %c0_0] : memref<128x392xf32, #tpu.memory_space<vmem>>, vector<128x392xf32>
    %1 = arith.truncf %0 : vector<128x392xf32> to vector<128x392xbf16>
    %c0_1 = arith.constant 0 : index
    %c0_2 = arith.constant 0 : index
    %2 = vector.load %arg2[%c0_1, %c0_2] : memref<392x128xbf16, #tpu.memory_space<vmem>>, vector<392x128xbf16>
    %cst = arith.constant dense<0.000000e+00> : vector<128x128xf32>
    %3 = tpu.matmul %1, %2, %cst {dimension_numbers = #tpu.dot_dimension_numbers<[1], [0], [0], [1], [0, 0, 1, 1], [], []>} : vector<128x392xbf16>, vector<392x128xbf16>, vector<128x128xf32> -> vector<128x128xf32>
    %c0_3 = arith.constant 0 : index
    %c0_4 = arith.constant 0 : index
    %4 = vector.load %arg3[%c0_3, %c0_4] : memref<1x128xf32, #tpu.memory_space<vmem>>, vector<1x128xf32>
    %5 = vector.broadcast %4 : vector<1x128xf32> to vector<128x128xf32>
    %6 = arith.addf %3, %5 : vector<128x128xf32>
    %cst_5 = arith.constant 0.000000e+00 : f32
    %7 = vector.broadcast %cst_5 : f32 to vector<128x128xf32>
    %8 = arith.maximumf %6, %7 : vector<128x128xf32>
    %9 = arith.truncf %8 : vector<128x128xf32> to vector<128x128xbf16>
    %c0_6 = arith.constant 0 : index
    %c0_7 = arith.constant 0 : index
    %10 = vector.load %arg4[%c0_6, %c0_7] : memref<128x128xbf16, #tpu.memory_space<vmem>>, vector<128x128xbf16>
    %cst_8 = arith.constant dense<0.000000e+00> : vector<128x128xf32>
    %11 = tpu.matmul %9, %10, %cst_8 {dimension_numbers = #tpu.dot_dimension_numbers<[1], [0], [0], [1], [0, 0, 1, 1], [], []>} : vector<128x128xbf16>, vector<128x128xbf16>, vector<128x128xf32> -> vector<128x128xf32>
    %c0_9 = arith.constant 0 : index
    %c0_10 = arith.constant 0 : index
    %12 = vector.load %arg5[%c0_9, %c0_10] : memref<1x128xf32, #tpu.memory_space<vmem>>, vector<1x128xf32>
    %13 = vector.broadcast %12 : vector<1x128xf32> to vector<128x128xf32>
    %14 = arith.addf %11, %13 : vector<128x128xf32>
    %cst_11 = arith.constant 0.000000e+00 : f32
    %15 = vector.broadcast %cst_11 : f32 to vector<128x128xf32>
    %16 = arith.maximumf %14, %15 : vector<128x128xf32>
    %c0_12 = arith.constant 0 : index
    %c0_13 = arith.constant 0 : index
    %17 = vector.load %arg6[%c0_12, %c0_13] : memref<1x128xf32, #tpu.memory_space<vmem>>, vector<1x128xf32>
    %18 = vector.broadcast %17 : vector<1x128xf32> to vector<128x128xf32>
    %19 = arith.mulf %16, %18 : vector<128x128xf32>
    %cst_14 = arith.constant dense<0.000000e+00> : vector<128xf32>
    %20 = vector.multi_reduction <add>, %19, %cst_14 [1] : vector<128x128xf32> to vector<128xf32>
    %21 = vector.shape_cast %20 : vector<128xf32> to vector<128x1xf32>
    %c0_15 = arith.constant 0 : index
    %c0_16 = arith.constant 0 : index
    %22 = memref.load %arg7[%c0_15, %c0_16] : memref<1x1xf32, #tpu.memory_space<smem>>
    %23 = vector.broadcast %22 : f32 to vector<128x1xf32>
    %24 = arith.addf %21, %23 : vector<128x1xf32>
    %25 = tpu.iota {dimensions = array<i32: 0>} : vector<128x128xi32>
    %26 = tpu.iota {dimensions = array<i32: 1>} : vector<128x128xi32>
    %27 = arith.cmpi eq, %25, %26 : vector<128x128xi32>
    %cst_17 = arith.constant 0.000000e+00 : f32
    %28 = vector.shape_cast %24 : vector<128x1xf32> to vector<128x1xf32>
    %29 = vector.broadcast %28 : vector<128x1xf32> to vector<128x128xf32>
    %30 = vector.broadcast %cst_17 : f32 to vector<128x128xf32>
    %31 = arith.select %27, %29, %30 : vector<128x128xi1>, vector<128x128xf32>
    %cst_18 = arith.constant dense<0.000000e+00> : vector<128xf32>
    %32 = vector.multi_reduction <add>, %31, %cst_18 [0] : vector<128x128xf32> to vector<128xf32>
    %c0_19 = arith.constant 0 : index
    %c0_20 = arith.constant 0 : index
    %c0_21 = arith.constant 0 : index
    %33 = vector.load %arg8[%c0_19, %c0_20, %c0_21] : memref<1x1x128xf32, #tpu.memory_space<vmem>>, vector<1x1x128xf32>
    %34 = vector.shape_cast %33 : vector<1x1x128xf32> to vector<128xf32>
    %35 = vector.shape_cast %32 : vector<128xf32> to vector<1x1x128xf32>
    tpu.vector_store %arg8[%c0_19, %c0_20, %c0_21], %35 {strides = array<i32>} : memref<1x1x128xf32, #tpu.memory_space<vmem>>, vector<1x1x128xf32>,
    return
  }
  func.func @transform_0(%arg0: i32) -> (i32, i32) {
    %c0_i32 = arith.constant 0 : i32
    %c0_i32_0 = arith.constant 0 : i32
    return %arg0, %c0_i32 : i32, i32
  }
  func.func @transform_1(%arg0: i32) -> (i32, i32) {
    %c0_i32 = arith.constant 0 : i32
    %c0_i32_0 = arith.constant 0 : i32
    %c0_i32_1 = arith.constant 0 : i32
    return %c0_i32, %c0_i32_0 : i32, i32
  }
  func.func @transform_2(%arg0: i32) -> (i32, i32) {
    %c0_i32 = arith.constant 0 : i32
    %c0_i32_0 = arith.constant 0 : i32
    %c0_i32_1 = arith.constant 0 : i32
    return %c0_i32, %c0_i32_0 : i32, i32
  }
  func.func @transform_3(%arg0: i32) -> (i32, i32) {
    %c0_i32 = arith.constant 0 : i32
    %c0_i32_0 = arith.constant 0 : i32
    %c0_i32_1 = arith.constant 0 : i32
    return %c0_i32, %c0_i32_0 : i32, i32
  }
  func.func @transform_4(%arg0: i32) -> (i32, i32) {
    %c0_i32 = arith.constant 0 : i32
    %c0_i32_0 = arith.constant 0 : i32
    %c0_i32_1 = arith.constant 0 : i32
    return %c0_i32, %c0_i32_0 : i32, i32
  }
  func.func @transform_5(%arg0: i32) -> (i32, i32) {
    %c0_i32 = arith.constant 0 : i32
    %c0_i32_0 = arith.constant 0 : i32
    %c0_i32_1 = arith.constant 0 : i32
    return %c0_i32, %c0_i32_0 : i32, i32
  }
  func.func @transform_6(%arg0: i32) -> (i32, i32) {
    %c0_i32 = arith.constant 0 : i32
    %c0_i32_0 = arith.constant 0 : i32
    %c0_i32_1 = arith.constant 0 : i32
    return %c0_i32, %c0_i32_0 : i32, i32
  }
  func.func @transform_7(%arg0: i32) -> (i32, i32, i32) {
    %c0_i32 = arith.constant 0 : i32
    %c0_i32_0 = arith.constant 0 : i32
    %c0_i32_1 = arith.constant 0 : i32
    return %arg0, %c0_i32, %c0_i32_0 : i32, i32, i32
  }
}

</mosaic_0001>

<bundles_post_ra>
// kernel: tpu_custom_call.1
= control target key start
LH: loop header
LB: loop body
LE: loop exit
PB: predicated region body
PF: predicated region fallthrough
CT: control target
= control target key end

     0   :  { %v1150_v1 = vmov 0   ;;  %vm328_vm0 = vcmask 64512   ;;  %vm353_vm1 = vcmask 1043456   ;;  %s1632_s0 = inlined_call_operand.vmem [shape: f32[128,392], index: 0, kind: input, shape index: {}]   ;;  %s1633_s1 = inlined_call_operand.vmem [shape: bf16[392,128], index: 1, kind: input, shape index: {}]   ;;  %s1634_s2 = inlined_call_operand.vmem [shape: f32[1,128], index: 2, kind: input, shape index: {}]   ;;  %s1635_s3 = inlined_call_operand.vmem [shape: bf16[128,128], index: 3, kind: input, shape index: {}]   ;;  %s1636_s4 = inlined_call_operand.vmem [shape: f32[1,128], index: 4, kind: input, shape index: {}]   ;;  %s1637_s5 = inlined_call_operand.vmem [shape: f32[1,128], index: 5, kind: input, shape index: {}]   ;;  %s1638_s6 = inlined_call_operand.<no memory space> [shape: f32[1,1], index: 6, kind: input, shape index: {}]   ;;  %s1639_s7 = inlined_call_operand.hbm [shape: f32[1,1,128], index: 7, kind: output, shape index: {}]  }
   0x1   :  { %v1093_v0 = vld [vmem:[%s1633_s1 + $0x40] sm:$0xff]   ;;  %454 = vmatprep.subr.bf16.mxu1 %v1150_v1  ;;  %v1096_v4 = vld [vmem:[%s1633_s1 + $0x48] sm:$0xff]   ;;  %v1099_v7 = vld [vmem:[%s1633_s1 + $0x50] sm:$0xff]  }
   0x2   :  { %v1094_v2 = vld [vmem:[%s1633_s1 + $0x80] sm:$0xff]   ;;  %963 = vmatprep.subr.bf16.mxu0 %v1093_v0  ;;  %v1097_v5 = vld [vmem:[%s1633_s1 + $0x88] sm:$0xff]   ;;  %v1100_v8 = vld [vmem:[%s1633_s1 + $0x90] sm:$0xff]  }
   0x3   :  { %v1095_v3 = vld [vmem:[%s1633_s1] sm:$0xff]   ;;  %455 = vmatpush1.bf16.msra.mxu1 %v1094_v2  ;;  %v1098_v6 = vld [vmem:[%s1633_s1 + $0x8] sm:$0xff]   ;;  %v1101_v9 = vld [vmem:[%s1633_s1 + $0x10] sm:$0xff]  }
   0x4   :  { %964 = vmatpush3.bf16.msra.mxu0 %v1095_v3  ;;  %456 = vmatprep.subr.bf16.mxu1 %v1150_v1  ;;  %v1102_v10 = vld [vmem:[%s1633_s1 + $0x58] sm:$0xff]   ;;  %v1105_v13 = vld [vmem:[%s1633_s1 + $0x60] sm:$0xff]   ;;  %v1108_v16 = vld [vmem:[%s1633_s1 + $0x68] sm:$0xff]  }
   0x5   :  { %965 = vmatprep.subr.bf16.mxu0 %v1096_v4  ;;  %v1103_v11 = vld [vmem:[%s1633_s1 + $0x98] sm:$0xff]   ;;  %v1106_v14 = vld [vmem:[%s1633_s1 + $0xa0] sm:$0xff]   ;;  %v1109_v17 = vld [vmem:[%s1633_s1 + $0xa8] sm:$0xff]  }
   0x6   :  { %v1104_v12 = vld [vmem:[%s1633_s1 + $0x18] sm:$0xff]   ;;  %v1107_v15 = vld [vmem:[%s1633_s1 + $0x20] sm:$0xff]   ;;  %v1110_v18 = vld [vmem:[%s1633_s1 + $0x28] sm:$0xff]  }
   0x7   :  { %457 = vmatpush1.bf16.msra.mxu1 %v1097_v5  ;;  %v1111_v19 = vld [vmem:[%s1633_s1 + $0x70] sm:$0xff]   ;;  %v30_v22 = vld [vmem:[%s1632_s0 + $0x8] sm:$0xff]  ;;  %v1114_v24 = vld [vmem:[%s1633_s1 + $0x78] sm:$0xff]  }
   0x8   :  { %966 = vmatpush3.bf16.msra.mxu0 %v1098_v6  ;;  %458 = vmatprep.subr.bf16.mxu1 %v1150_v1  ;;  %v1112_v20 = vld [vmem:[%s1633_s1 + $0xb0] sm:$0xff]   ;;  %v34_v23 = vld [vmem:[%s1632_s0 + $0x28] sm:$0xff]  ;;  %v32_v26 = vld [vmem:[%s1632_s0 + $0x18] sm:$0xff] }
   0x9   :  { %967 = vmatprep.subr.bf16.mxu0 %v1099_v7  ;;  %v1113_v21 = vld [vmem:[%s1633_s1 + $0x30] sm:$0xff]   ;;  %v94_v25 = vpack.c.bf16 %v34_v23, %v30_v22  ;;  %v36_v27 = vld [vmem:[%s1632_s0 + $0x38] sm:$0xff]  ;;  %v29_v31 = vld [vmem:[%s1632_s0] sm:$0xff] }
   0xa   :  { %v1115_v28 = vld [vmem:[%s1633_s1 + $0xb8] sm:$0xff]   ;;  %v96_v30 = vpack.c.bf16 %v36_v27, %v32_v26  ;;  %v33_v32 = vld [vmem:[%s1632_s0 + $0x20] sm:$0xff]  ;;  %v38_v34 = vld [vmem:[%s1632_s0 + $0x48] sm:$0xff] }
   0xb   :  { %459 = vmatpush1.bf16.msra.mxu1 %v1100_v8  ;;  %v1116_v29 = vld [vmem:[%s1633_s1 + $0x38] sm:$0xff]   ;;  %389 = vmatprep.mubr.bf16.mxu0 %v94_v25  ;;  %v1117_v33 = vld [vmem:[%s1633_s1 + $0xc0] ss:$0 sps:$4 sm:$0xff]   ;;  %v42_v35 = vld [vmem:[%s1632_s0 + $0x68] sm:$0xff]  ;;  %v93_v36 = vpack.c.bf16 %v33_v32, %v29_v31 }
   0xc   :  { %968 = vmatpush3.bf16.msra.mxu0 %v1101_v9  ;;  %460 = vmatprep.subr.bf16.mxu1 %v1150_v1  ;;  %v31_v37 = vld [vmem:[%s1632_s0 + $0x10] sm:$0xff]  ;;  %v355_v39 = vsel %vm353_vm1, %v1117_v33, 0  ;;  %v98_v40 = vpack.c.bf16 %v42_v35, %v38_v34  ;;  %v40_v41 = vld [vmem:[%s1632_s0 + $0x58] sm:$0xff]  ;;  %v37_v45 = vld [vmem:[%s1632_s0 + $0x40] sm:$0xff] }
   0xd   :  { %969 = vmatprep.subr.bf16.mxu0 %v1102_v10  ;;  %945 = vmatprep.mubr.msk.bf16.mxu1 %vm328_vm0, %v96_v30  ;;  %v35_v38 = vld [vmem:[%s1632_s0 + $0x30] sm:$0xff]  ;;  %v44_v42 = vld [vmem:[%s1632_s0 + $0x78] sm:$0xff]  ;;  %v41_v46 = vld [vmem:[%s1632_s0 + $0x60] sm:$0xff] }
   0xe   :  { %v95_v43 = vpack.c.bf16 %v35_v38, %v31_v37  ;;  %v100_v44 = vpack.c.bf16 %v44_v42, %v40_v41  ;;  %v46_v47 = vld [vmem:[%s1632_s0 + $0x88] sm:$0xff]  ;;  %v97_v49 = vpack.c.bf16 %v41_v46, %v37_v45  ;;  %v39_v50 = vld [vmem:[%s1632_s0 + $0x50] sm:$0xff]  ;;  %v48_v53 = vld [vmem:[%s1632_s0 + $0x98] sm:$0xff] }
   0xf   :  { %461 = vmatpush1.bf16.msra.mxu1 %v1103_v11  ;;  %v50_v48 = vld [vmem:[%s1632_s0 + $0xa8] sm:$0xff]  ;;  %v43_v51 = vld [vmem:[%s1632_s0 + $0x70] sm:$0xff]  ;;  %v52_v54 = vld [vmem:[%s1632_s0 + $0xb8] sm:$0xff] }
  0x10   :  { %970 = vmatpush3.bf16.msra.mxu0 %v1104_v12  ;;  %462 = vmatprep.subr.bf16.mxu1 %v1150_v1  ;;  %v102_v52 = vpack.c.bf16 %v50_v48, %v46_v47  ;;  %v99_v55 = vpack.c.bf16 %v43_v51, %v39_v50  ;;  %v104_v56 = vpack.c.bf16 %v52_v54, %v48_v53  ;;  %v45_v57 = vld [vmem:[%s1632_s0 + $0x80] sm:$0xff]  ;;  %v47_v59 = vld [vmem:[%s1632_s0 + $0x90] sm:$0xff]  ;;  %v54_v61 = vld [vmem:[%s1632_s0 + $0xc8] sm:$0xff] }
  0x11   :  { %971 = vmatprep.subr.bf16.mxu0 %v1105_v13  ;;  %v49_v58 = vld [vmem:[%s1632_s0 + $0xa0] sm:$0xff]  ;;  %v51_v60 = vld [vmem:[%s1632_s0 + $0xb0] sm:$0xff]  ;;  %v58_v62 = vld [vmem:[%s1632_s0 + $0xe8] sm:$0xff] }
  0x12   :  { %v56_v63 = vld [vmem:[%s1632_s0 + $0xd8] sm:$0xff]  ;;  %v101_v2 = vpack.c.bf16 %v49_v58, %v45_v57  ;;  %v1119_v3 = vld [vmem:[%s1635_s3 + $0x8] sm:$0xff]   ;;  %v106_v4 = vpack.c.bf16 %v58_v62, %v54_v61  ;;  %v1120_v5 = vld [vmem:[%s1635_s3 + $0x10] sm:$0xff]   ;;  %v103_v6 = vpack.c.bf16 %v51_v60, %v47_v59 }
  0x13   :  { %463 = vmatpush1.bf16.msra.mxu1 %v1106_v14  ;;  %v60_v0 = vld [vmem:[%s1632_s0 + $0xf8] sm:$0xff]  ;;  %v53_v7 = vld [vmem:[%s1632_s0 + $0xc0] sm:$0xff] }
  0x14   :  { %972 = vmatpush3.bf16.msra.mxu0 %v1107_v15  ;;  %464 = vmatprep.subr.bf16.mxu1 %v1150_v1  ;;  %v108_v8 = vpack.c.bf16 %v60_v0, %v56_v63  ;;  %v57_v9 = vld [vmem:[%s1632_s0 + $0xe0] sm:$0xff] }
  0x15   :  { %973 = vmatprep.subr.bf16.mxu0 %v1108_v16 }
  0x17   :  { %465 = vmatpush1.bf16.msra.mxu1 %v1109_v17 }
  0x18   :  { %974 = vmatpush3.bf16.msra.mxu0 %v1110_v18  ;;  %466 = vmatprep.subr.bf16.mxu1 %v1150_v1 }
  0x19   :  { %975 = vmatprep.subr.bf16.mxu0 %v1111_v19 }
  0x1b   :  { %467 = vmatpush1.bf16.msra.mxu1 %v1112_v20 }
  0x1c   :  { %976 = vmatpush3.bf16.msra.mxu0 %v1113_v21  ;;  %468 = vmatprep.subr.bf16.mxu1 %v1150_v1 }
  0x1d   :  { %977 = vmatprep.subr.bf16.mxu0 %v1114_v24 }
  0x1f   :  { %469 = vmatpush1.bf16.msra.mxu1 %v1115_v28 }
  0x20   :  { %978 = vmatpush3.bf16.msra.mxu0 %v1116_v29  ;;  %470 = vmatprep.subr.bf16.mxu1 %v1150_v1  ;;  %v1118_v1 = vld [vmem:[%s1635_s3] sm:$0xff]  }
  0x21   :  { %1043 = vmatprep.subr.bf16.mxu0 %v1118_v1 }
  0x23   :  { %390 = vmatmul.mubr.bf16.vlgmr.msra.gmra.mrb[0].mxu0 %v93_v36  ;;  %471 = vmatpush1.bf16.msra.mxu1 %v355_v39 }
  0x24   :  { %397 = vmatprep.mubr.bf16.mxu0 %v98_v40  ;;  %1075 = vmatprep.subr.bf16.mxu1 %v1118_v1 }
  0x25   :  { %1044 = vmatpush3.bf16.msra.mxu0 %v1118_v1 }
  0x26   :  { %487 = vmatmul.mubr.bf16.vlgmr.msra.gmra.mrb[0].mxu1 %v95_v43  ;;  %1045 = vmatprep.subr.bf16.mxu0 %v1119_v3 }
  0x27   :  { %946 = vmatprep.mubr.msk.bf16.mxu1 %vm328_vm0, %v100_v44  ;;  %1083 = vmatpush3.bf16.msra.mxu1 %v1118_v1 }
  0x28   :  { %1076 = vmatprep.subr.bf16.mxu1 %v1119_v3 }
  0x2b   :  { %398 = vmatmul.mubr.bf16.gmra.mrb[4].mxu0 %v97_v49 }
  0x2c   :  { %405 = vmatprep.mubr.bf16.mxu0 %v102_v52 }
  0x2e   :  { %495 = vmatmul.mubr.bf16.gmra.mrb[4].mxu1 %v99_v55 }
  0x2f   :  { %947 = vmatprep.mubr.msk.bf16.mxu1 %vm328_vm0, %v104_v56 }
  0x33   :  { %406 = vmatmul.mubr.bf16.gmra.mrb[8].mxu0 %v101_v2 }
  0x34   :  { %413 = vmatprep.mubr.bf16.mxu0 %v106_v4 }
  0x35   :  { %13 = vsyncpa [#allocation4], 0  ;;  %v62_v10 = vld [vmem:[%s1632_s0 + $0x108] sm:$0xff]  ;;  %1046 = vmatpush3.bf16.msra.mxu0 %v1119_v3  ;;  %1084 = vmatpush3.bf16.msra.mxu1 %v1119_v3  ;;  %v105_v12 = vpack.c.bf16 %v57_v9, %v53_v7  ;;  %v55_v13 = vld [vmem:[%s1632_s0 + $0xd0] sm:$0xff] }
  0x36   :  { %v66_v11 = vld [vmem:[%s1632_s0 + $0x128] sm:$0xff]  ;;  %503 = vmatmul.mubr.bf16.gmra.mrb[8].mxu1 %v103_v6  ;;  %1047 = vmatprep.subr.bf16.mxu0 %v1120_v5  ;;  %v59_v14 = vld [vmem:[%s1632_s0 + $0xf0] sm:$0xff]  ;;  %v64_v16 = vld [vmem:[%s1632_s0 + $0x118] sm:$0xff] }
  0x37   :  { %948 = vmatprep.mubr.msk.bf16.mxu1 %vm328_vm0, %v108_v8  ;;  %1077 = vmatprep.subr.bf16.mxu1 %v1120_v5  ;;  %v110_v15 = vpack.c.bf16 %v66_v11, %v62_v10  ;;  %v68_v17 = vld [vmem:[%s1632_s0 + $0x138] sm:$0xff]  ;;  %v107_v18 = vpack.c.bf16 %v59_v14, %v55_v13  ;;  %v61_v20 = vld [vmem:[%s1632_s0 + $0x100] sm:$0xff]  ;;  %v70_v22 = vld [vmem:[%s1632_s0 + $0x148] sm:$0xff] }
  0x38   :  { %v112_v19 = vpack.c.bf16 %v68_v17, %v64_v16  ;;  %v65_v21 = vld [vmem:[%s1632_s0 + $0x120] sm:$0xff]  ;;  %v74_v23 = vld [vmem:[%s1632_s0 + $0x168] sm:$0xff]  ;;  %v63_v25 = vld [vmem:[%s1632_s0 + $0x110] sm:$0xff] }
  0x39   :  { %1048 = vmatpush3.bf16.msra.mxu0 %v1120_v5  ;;  %1085 = vmatpush3.bf16.msra.mxu1 %v1120_v5  ;;  %v109_v24 = vpack.c.bf16 %v65_v21, %v61_v20  ;;  %v67_v26 = vld [vmem:[%s1632_s0 + $0x130] sm:$0xff]  ;;  %v114_v27 = vpack.c.bf16 %v74_v23, %v70_v22  ;;  %v72_v28 = vld [vmem:[%s1632_s0 + $0x158] sm:$0xff]  ;;  %v69_v32 = vld [vmem:[%s1632_s0 + $0x140] sm:$0xff] }
  0x3a   :  { %v76_v29 = vld [vmem:[%s1632_s0 + $0x178] sm:$0xff]  ;;  %v111_v30 = vpack.c.bf16 %v67_v26, %v63_v25  ;;  %v73_v33 = vld [vmem:[%s1632_s0 + $0x160] sm:$0xff]  ;;  %v78_v34 = vld [vmem:[%s1632_s0 + $0x188] sm:$0xff] }
  0x3b   :  { %414 = vmatmul.mubr.bf16.gmra.mrb[12].mxu0 %v105_v12  ;;  %v116_v31 = vpack.c.bf16 %v76_v29, %v72_v28  ;;  %v82_v35 = vld [vmem:[%s1632_s0 + $0x1a8] sm:$0xff]  ;;  %v113_v36 = vpack.c.bf16 %v73_v33, %v69_v32  ;;  %v71_v37 = vld [vmem:[%s1632_s0 + $0x150] sm:$0xff]  ;;  %v80_v40 = vld [vmem:[%s1632_s0 + $0x198] sm:$0xff] }
  0x3c   :  { %421 = vmatprep.mubr.bf16.mxu0 %v110_v15  ;;  %v75_v38 = vld [vmem:[%s1632_s0 + $0x170] sm:$0xff]  ;;  %v118_v39 = vpack.c.bf16 %v82_v35, %v78_v34  ;;  %v84_v41 = vld [vmem:[%s1632_s0 + $0x1b8] sm:$0xff]  ;;  %v77_v44 = vld [vmem:[%s1632_s0 + $0x180] sm:$0xff] }
  0x3d   :  { %v115_v42 = vpack.c.bf16 %v75_v38, %v71_v37  ;;  %v120_v43 = vpack.c.bf16 %v84_v41, %v80_v40  ;;  %v81_v45 = vld [vmem:[%s1632_s0 + $0x1a0] sm:$0xff]  ;;  %v86_v46 = vld [vmem:[%s1632_s0 + $0x1c8] sm:$0xff]  ;;  %v79_v49 = vld [vmem:[%s1632_s0 + $0x190] sm:$0xff] }
  0x3e   :  { %511 = vmatmul.mubr.bf16.gmra.mrb[12].mxu1 %v107_v18  ;;  %v90_v47 = vld [vmem:[%s1632_s0 + $0x1e8] sm:$0xff]  ;;  %v117_v48 = vpack.c.bf16 %v81_v45, %v77_v44  ;;  %v83_v50 = vld [vmem:[%s1632_s0 + $0x1b0] sm:$0xff]  ;;  %v88_v52 = vld [vmem:[%s1632_s0 + $0x1d8] sm:$0xff] }
  0x3f   :  { %949 = vmatprep.mubr.msk.bf16.mxu1 %vm328_vm0, %v112_v19  ;;  %v122_v51 = vpack.c.bf16 %v90_v47, %v86_v46  ;;  %v92_v53 = vld [vmem:[%s1632_s0 + $0x1f8] sm:$0xff]  ;;  %v119_v54 = vpack.c.bf16 %v83_v50, %v79_v49  ;;  %v85_v56 = vld [vmem:[%s1632_s0 + $0x1c0] sm:$0xff]  ;;  %v87_v59 = vld [vmem:[%s1632_s0 + $0x1d0] sm:$0xff] }
  0x40   :  { %v124_v55 = vpack.c.bf16 %v92_v53, %v88_v52  ;;  %v89_v57 = vld [vmem:[%s1632_s0 + $0x1e0] sm:$0xff]  ;;  %v91_v60 = vld [vmem:[%s1632_s0 + $0x1f0] sm:$0xff]  ;;  %v1121_v62 = vld [vmem:[%s1635_s3 + $0x18] sm:$0xff]  }
  0x41   :  { %v121_v58 = vpack.c.bf16 %v89_v57, %v85_v56  ;;  %v123_v61 = vpack.c.bf16 %v91_v60, %v87_v59  ;;  %1049 = vmatprep.subr.bf16.mxu0 %v1121_v62  ;;  %1078 = vmatprep.subr.bf16.mxu1 %v1121_v62  ;;  %v1122_v63 = vld [vmem:[%s1635_s3 + $0x20] sm:$0xff]   ;;  %v1123_v0 = vld [vmem:[%s1635_s3 + $0x28] sm:$0xff]   ;;  %v1124_v1 = vld [vmem:[%s1635_s3 + $0x30] sm:$0xff]  }
  0x42   :  { %1050 = vmatpush3.bf16.msra.mxu0 %v1121_v62  ;;  %1086 = vmatpush3.bf16.msra.mxu1 %v1121_v62  ;;  %v1125_v2 = vld [vmem:[%s1635_s3 + $0x38] sm:$0xff]   ;;  %v1503_v5 = vld [vmem:[%s1634_s2] ss:$0 sm:$0xff] }
  0x43   :  { %422 = vmatmul.mubr.bf16.gmra.mrb[16].mxu0 %v109_v24  ;;  %1051 = vmatprep.subr.bf16.mxu0 %v1122_v63 }
  0x44   :  { %429 = vmatprep.mubr.bf16.mxu0 %v114_v27  ;;  %1079 = vmatprep.subr.bf16.mxu1 %v1122_v63 }
  0x46   :  { %519 = vmatmul.mubr.bf16.gmra.mrb[16].mxu1 %v111_v30  ;;  %1052 = vmatpush3.bf16.msra.mxu0 %v1122_v63 }
  0x47   :  { %950 = vmatprep.mubr.msk.bf16.mxu1 %vm328_vm0, %v116_v31  ;;  %1087 = vmatpush3.bf16.msra.mxu1 %v1122_v63 }
  0x48   :  { %1053 = vmatprep.subr.bf16.mxu0 %v1123_v0  ;;  %1080 = vmatprep.subr.bf16.mxu1 %v1123_v0 }
  0x4a   :  { %1054 = vmatpush3.bf16.msra.mxu0 %v1123_v0 }
  0x4b   :  { %430 = vmatmul.mubr.bf16.gmra.mrb[20].mxu0 %v113_v36  ;;  %1088 = vmatpush3.bf16.msra.mxu1 %v1123_v0 }
  0x4c   :  { %437 = vmatprep.mubr.bf16.mxu0 %v118_v39  ;;  %1055 = vmatprep.subr.bf16.mxu0 %v1124_v1 }
  0x4d   :  { %1081 = vmatprep.subr.bf16.mxu1 %v1124_v1 }
  0x4e   :  { %527 = vmatmul.mubr.bf16.gmra.mrb[20].mxu1 %v115_v42  ;;  %1056 = vmatpush3.bf16.msra.mxu0 %v1124_v1 }
  0x4f   :  { %951 = vmatprep.mubr.msk.bf16.mxu1 %vm328_vm0, %v120_v43  ;;  %1089 = vmatpush3.bf16.msra.mxu1 %v1124_v1 }
  0x50   :  { %1057 = vmatprep.subr.bf16.mxu0 %v1125_v2  ;;  %1082 = vmatprep.subr.bf16.mxu1 %v1125_v2 }
  0x52   :  { %1058 = vmatpush3.bf16.msra.mxu0 %v1125_v2 }
  0x53   :  { %438 = vmatmul.mubr.bf16.gmra.mrb[24].mxu0 %v117_v48  ;;  %1090 = vmatpush3.bf16.msra.mxu1 %v1125_v2 }
  0x54   :  { %445 = vmatprep.mubr.bf16.mxu0 %v122_v51 }
  0x56   :  { %535 = vmatmul.mubr.bf16.gmra.mrb[24].mxu1 %v119_v54 }
  0x57   :  { %952 = vmatprep.mubr.msk.bf16.mxu1 %vm328_vm0, %v124_v55 }
  0x5b   :  { %446 = vmatmul.mubr.bf16.gmra.mrb[28].mxu0 %v121_v58 }
  0x5e   :  { %543 = vmatmul.mubr.bf16.gmra.mrb[28].mxu1 %v123_v61 }
  0xf6   :  { %v979_v3 = vpop.f32.mrb[0].mxu0 }
  0xf7   :  { %v980_v4 = vpop.f32.mrb[1].mxu0 }
  0xf8   :  { %v981_v6 = vadd.f32 %v980_v4, %v979_v3  ;;  %v982_v7 = vpop.f32.mrb[2].mxu0 }
  0xf9   :  { %v983_v8 = vpop.f32.mrb[3].mxu0  ;;  %v488_v9 = vpop.f32.mrb[0].mxu1 }
  0xfa   :  { %v984_v10 = vadd.f32 %v983_v8, %v982_v7  ;;  %v392_v11 = vadd.f32 %v981_v6, %v1503_v5  ;;  %v490_v12 = vpop.f32.mrb[1].mxu1 }
  0xfb   :  { %v491_v13 = vpop.f32.mrb[2].mxu1 }
  0xfc   :  { %v489_v14 = vadd.f32 %v488_v9, %v392_v11  ;;  %v395_v15 = vadd.f32 %v984_v10, %v1503_v5  ;;  %v493_v16 = vpop.f32.mrb[3].mxu1 }
  0xfe   :  { %v492_v17 = vadd.f32 %v491_v13, %v395_v15  ;;  %v985_v18 = vpop.f32.mrb[4].mxu0  ;;  %v551_v20 = vmax.f32 %v489_v14, 0.0 }
  0xff   :  { %v986_v19 = vpop.f32.mrb[5].mxu0 }
 0x100   :  { %v552_v21 = vmax.f32 %v492_v17, 0.0  ;;  %v987_v22 = vadd.f32 %v986_v19, %v985_v18  ;;  %v988_v23 = vpop.f32.mrb[6].mxu0 }
 0x101   :  { %v989_v24 = vpop.f32.mrb[7].mxu0  ;;  %v496_v25 = vpop.f32.mrb[4].mxu1 }
 0x102   :  { %v567_v26 = vpack.c.bf16 %v552_v21, %v551_v20  ;;  %v990_v27 = vadd.f32 %v989_v24, %v988_v23  ;;  %v400_v28 = vadd.f32 %v987_v22, %v1503_v5  ;;  %v498_v29 = vpop.f32.mrb[5].mxu1 }
 0x103   :  { %v499_v30 = vpop.f32.mrb[6].mxu1 }
 0x104   :  { %v497_v31 = vadd.f32 %v496_v25, %v400_v28  ;;  %v403_v32 = vadd.f32 %v990_v27, %v1503_v5  ;;  %v501_v33 = vpop.f32.mrb[7].mxu1  ;;  %1059 = vmatprep.mubr.bf16.mxu0 %v567_v26 }
 0x106   :  { %v500_v34 = vadd.f32 %v499_v30, %v403_v32  ;;  %v991_v35 = vpop.f32.mrb[8].mxu0  ;;  %v553_v37 = vmax.f32 %v497_v31, 0.0 }
 0x107   :  { %v992_v36 = vpop.f32.mrb[9].mxu0 }
 0x108   :  { %v554_v38 = vmax.f32 %v500_v34, 0.0  ;;  %v993_v39 = vadd.f32 %v992_v36, %v991_v35  ;;  %v994_v40 = vpop.f32.mrb[10].mxu0 }
 0x109   :  { %v995_v41 = vpop.f32.mrb[11].mxu0  ;;  %v504_v42 = vpop.f32.mrb[8].mxu1 }
 0x10a   :  { %v568_v43 = vpack.c.bf16 %v554_v38, %v553_v37  ;;  %v996_v44 = vadd.f32 %v995_v41, %v994_v40  ;;  %v408_v45 = vadd.f32 %v993_v39, %v1503_v5  ;;  %v506_v46 = vpop.f32.mrb[9].mxu1 }
 0x10b   :  { %v507_v47 = vpop.f32.mrb[10].mxu1 }
 0x10c   :  { %v505_v48 = vadd.f32 %v504_v42, %v408_v45  ;;  %v411_v49 = vadd.f32 %v996_v44, %v1503_v5  ;;  %v509_v50 = vpop.f32.mrb[11].mxu1  ;;  %1060 = vmatmul.mubr.bf16.vlgmr.msra.gmra.mrb[32].mxu0 %v568_v43 }
 0x10e   :  { %v508_v51 = vadd.f32 %v507_v47, %v411_v49  ;;  %v997_v52 = vpop.f32.mrb[12].mxu0  ;;  %v555_v54 = vmax.f32 %v505_v48, 0.0 }
 0x10f   :  { %v998_v53 = vpop.f32.mrb[13].mxu0 }
 0x110   :  { %v556_v55 = vmax.f32 %v508_v51, 0.0  ;;  %v999_v56 = vadd.f32 %v998_v53, %v997_v52  ;;  %v1000_v57 = vpop.f32.mrb[14].mxu0 }
 0x111   :  { %v1001_v58 = vpop.f32.mrb[15].mxu0  ;;  %v512_v59 = vpop.f32.mrb[12].mxu1 }
 0x112   :  { %v569_v60 = vpack.c.bf16 %v556_v55, %v555_v54  ;;  %v1002_v61 = vadd.f32 %v1001_v58, %v1000_v57  ;;  %v416_v62 = vadd.f32 %v999_v56, %v1503_v5  ;;  %v514_v63 = vpop.f32.mrb[13].mxu1 }
 0x113   :  { %v515_v0 = vpop.f32.mrb[14].mxu1 }
 0x114   :  { %v513_v1 = vadd.f32 %v512_v59, %v416_v62  ;;  %v419_v2 = vadd.f32 %v1002_v61, %v1503_v5  ;;  %v517_v3 = vpop.f32.mrb[15].mxu1  ;;  %1063 = vmatprep.mubr.bf16.mxu0 %v569_v60 }
 0x116   :  { %v516_v4 = vadd.f32 %v515_v0, %v419_v2  ;;  %v1003_v6 = vpop.f32.mrb[16].mxu0  ;;  %v557_v8 = vmax.f32 %v513_v1, 0.0 }
 0x117   :  { %v1004_v7 = vpop.f32.mrb[17].mxu0 }
 0x118   :  { %v558_v9 = vmax.f32 %v516_v4, 0.0  ;;  %v1005_v10 = vadd.f32 %v1004_v7, %v1003_v6  ;;  %v1006_v11 = vpop.f32.mrb[18].mxu0 }
 0x119   :  { %v1007_v12 = vpop.f32.mrb[19].mxu0  ;;  %v520_v13 = vpop.f32.mrb[16].mxu1 }
 0x11a   :  { %v570_v14 = vpack.c.bf16 %v558_v9, %v557_v8  ;;  %v1008_v15 = vadd.f32 %v1007_v12, %v1006_v11  ;;  %v424_v16 = vadd.f32 %v1005_v10, %v1503_v5  ;;  %v522_v17 = vpop.f32.mrb[17].mxu1 }
 0x11b   :  { %v523_v18 = vpop.f32.mrb[18].mxu1 }
 0x11c   :  { %v521_v19 = vadd.f32 %v520_v13, %v424_v16  ;;  %v427_v20 = vadd.f32 %v1008_v15, %v1503_v5  ;;  %v525_v21 = vpop.f32.mrb[19].mxu1  ;;  %1064 = vmatmul.mubr.bf16.gmra.mrb[36].mxu0 %v570_v14  ;;  %v1524_v14 = vld [vmem:[%s1636_s4] ss:$0 sm:$0xff] }
 0x11e   :  { %v524_v22 = vadd.f32 %v523_v18, %v427_v20  ;;  %v1009_v23 = vpop.f32.mrb[20].mxu0  ;;  %v559_v25 = vmax.f32 %v521_v19, 0.0 }
 0x11f   :  { %v1010_v24 = vpop.f32.mrb[21].mxu0 }
 0x120   :  { %v560_v26 = vmax.f32 %v524_v22, 0.0  ;;  %v1011_v27 = vadd.f32 %v1010_v24, %v1009_v23  ;;  %v1012_v28 = vpop.f32.mrb[22].mxu0 }
 0x121   :  { %v1013_v29 = vpop.f32.mrb[23].mxu0  ;;  %v528_v30 = vpop.f32.mrb[20].mxu1 }
 0x122   :  { %v571_v31 = vpack.c.bf16 %v560_v26, %v559_v25  ;;  %v1014_v32 = vadd.f32 %v1013_v29, %v1012_v28  ;;  %v432_v33 = vadd.f32 %v1011_v27, %v1503_v5  ;;  %v530_v34 = vpop.f32.mrb[21].mxu1 }
 0x123   :  { %v531_v35 = vpop.f32.mrb[22].mxu1 }
 0x124   :  { %v529_v36 = vadd.f32 %v528_v30, %v432_v33  ;;  %v435_v37 = vadd.f32 %v1014_v32, %v1503_v5  ;;  %v533_v38 = vpop.f32.mrb[23].mxu1  ;;  %1067 = vmatprep.mubr.bf16.mxu0 %v571_v31 }
 0x126   :  { %v532_v39 = vadd.f32 %v531_v35, %v435_v37  ;;  %v1015_v40 = vpop.f32.mrb[24].mxu0  ;;  %v561_v42 = vmax.f32 %v529_v36, 0.0 }
 0x127   :  { %v1016_v41 = vpop.f32.mrb[25].mxu0 }
 0x128   :  { %v562_v43 = vmax.f32 %v532_v39, 0.0  ;;  %v1017_v44 = vadd.f32 %v1016_v41, %v1015_v40  ;;  %v1018_v45 = vpop.f32.mrb[26].mxu0 }
 0x129   :  { %v1019_v46 = vpop.f32.mrb[27].mxu0  ;;  %v536_v47 = vpop.f32.mrb[24].mxu1 }
 0x12a   :  { %v572_v48 = vpack.c.bf16 %v562_v43, %v561_v42  ;;  %v1020_v49 = vadd.f32 %v1019_v46, %v1018_v45  ;;  %v440_v50 = vadd.f32 %v1017_v44, %v1503_v5  ;;  %v538_v51 = vpop.f32.mrb[25].mxu1 }
 0x12b   :  { %v539_v52 = vpop.f32.mrb[26].mxu1 }
 0x12c   :  { %v537_v53 = vadd.f32 %v536_v47, %v440_v50  ;;  %v443_v54 = vadd.f32 %v1020_v49, %v1503_v5  ;;  %v541_v55 = vpop.f32.mrb[27].mxu1  ;;  %1068 = vmatmul.mubr.bf16.gmra.mrb[40].mxu0 %v572_v48 }
 0x12e   :  { %v540_v56 = vadd.f32 %v539_v52, %v443_v54  ;;  %v1021_v57 = vpop.f32.mrb[28].mxu0  ;;  %v563_v59 = vmax.f32 %v537_v53, 0.0 }
 0x12f   :  { %v1022_v58 = vpop.f32.mrb[29].mxu0 }
 0x130   :  { %v564_v60 = vmax.f32 %v540_v56, 0.0  ;;  %v1023_v61 = vadd.f32 %v1022_v58, %v1021_v57  ;;  %v1024_v62 = vpop.f32.mrb[30].mxu0 }
 0x131   :  { %v1025_v63 = vpop.f32.mrb[31].mxu0  ;;  %v544_v0 = vpop.f32.mrb[28].mxu1 }
 0x132   :  { %v573_v1 = vpack.c.bf16 %v564_v60, %v563_v59  ;;  %v1026_v2 = vadd.f32 %v1025_v63, %v1024_v62  ;;  %v448_v3 = vadd.f32 %v1023_v61, %v1503_v5  ;;  %v546_v4 = vpop.f32.mrb[29].mxu1 }
 0x133   :  { %v547_v6 = vpop.f32.mrb[30].mxu1 }
 0x134   :  { %v545_v7 = vadd.f32 %v544_v0, %v448_v3  ;;  %v451_v8 = vadd.f32 %v1026_v2, %v1503_v5  ;;  %v549_v9 = vpop.f32.mrb[31].mxu1  ;;  %1071 = vmatprep.mubr.bf16.mxu1 %v573_v1  ;;  %v1531_v5 = vld [vmem:[%s1637_s5] ss:$0 sm:$0xff] }
 0x136   :  { %v548_v10 = vadd.f32 %v547_v6, %v451_v8  ;;  %v565_v11 = vmax.f32 %v545_v7, 0.0 }
 0x138   :  { %v566_v12 = vmax.f32 %v548_v10, 0.0 }
 0x13a   :  { %v574_v13 = vpack.c.bf16 %v566_v12, %v565_v11 }
 0x13c   :  { %1072 = vmatmul.mubr.bf16.vlgmr.msra.gmra.mrb[32].mxu1 %v574_v13 }
 0x1df   :  { %v1061_v15 = vpop.f32.mrb[32].mxu0 }
 0x1e0   :  { %v689_v16 = vadd.f32 %v1061_v15, %v1524_v14  ;;  %v680_v17 = vpop.f32.mrb[33].mxu0 }
 0x1e1   :  { %v681_v18 = vadd.f32 %v1524_v14, %v680_v17  ;;  %v1062_v19 = vpop.f32.mrb[34].mxu0  ;;  %v832_v17 = vlaneseq }
 0x1e2   :  { %v745_v20 = vmax.f32 %v689_v16, 0.0  ;;  %v692_v21 = vadd.f32 %v1062_v19, %v1524_v14  ;;  %v683_v22 = vpop.f32.mrb[35].mxu0 }
 0x1e3   :  { %v743_v23 = vmax.f32 %v681_v18, 0.0  ;;  %v684_v24 = vadd.f32 %v1524_v14, %v683_v22  ;;  %v1563_v19 = vshrl.u32 %v832_v17, 7  ;;  %v1571_v22 = vand.u32 127, %v832_v17 }
 0x1e4   :  { %v746_v25 = vmax.f32 %v692_v21, 0.0  ;;  %v768_v26 = vmul.f32 %v1531_v5, %v745_v20  ;;  %v1569_v21 = vstv %s1638_s6  ;;  %s1151_s6 = smov [#allocation3]  }
 0x1e5   :  { %v744_v27 = vmax.f32 %v684_v24, 0.0  ;;  %v766_v28 = vmul.f32 %v1531_v5, %v743_v23  ;;  %vm851_vm3 = vcmp.eq.s32.totalorder %v1563_v19, %v1571_v22  ;;  %v847_v17 = vadd.s32 112, %v1563_v19  ;;  %s911_s8 = sshll.u32 %s1151_s6, 4  ;;  %s912_s8 = int_to_ptr.vmem [resolvable:$true] %s911_s8 }
 0x1e6   :  { %786 = vadd.xlane.f32.xlu1 %v768_v26  ;;  %v769_v29 = vmul.f32 %v1531_v5, %v746_v25  ;;  %v835_v25 = vadd.s32 16, %v1563_v19  ;;  %s1126_s9 = scalar_lea.vmem %s912_s8, 16  ;;  %s1130_s10 = scalar_lea.vmem %s912_s8, 32 }
 0x1e7   :  { %782 = vadd.xlane.f32.xlu0 %v766_v28  ;;  %v767_v30 = vmul.f32 %v1531_v5, %v744_v27  ;;  %vm865_vm0 = vcmp.eq.s32.totalorder %v847_v17, %v1571_v22  ;;  %p1127_p0 = scmp.ne.s32.totalorder %s912_s8, %s1126_s9  ;;  %p1131_p1 = scmp.lt.s32.totalorder %s912_s8, %s912_s8 }
 0x1e8   :  { %vm853_vm4 = vcmp.eq.s32.totalorder %v835_v25, %v1571_v22  ;;  %p1132_p2 = scmp.lt.s32.totalorder %s1130_s10, %s1126_s9 }
 0x1ea   :  { %788 = vadd.xlane.f32.xlu1 %v769_v29  ;;  %v836_v29 = vadd.s32 24, %v1563_v19  ;;  %p1133_p3 = por %p1132_p2, %p1131_p1 }
 0x1eb   :  { %784 = vadd.xlane.f32.xlu0 %v767_v30 }
 0x1ec   :  { %vm854_vm5 = vcmp.eq.s32.totalorder %v836_v29, %v1571_v22  ;;  %p1134_p4 = pnand %p1133_p3, %p1127_p0 }
 0x1ef   :  { %v1065_v31 = vpop.f32.mrb[36].mxu0 }
 0x1f0   :  { %v696_v32 = vpop.f32.mrb[37].mxu0  ;;  %v705_v33 = vadd.f32 %v1065_v31, %v1524_v14 }
 0x1f1   :  { %v697_v34 = vadd.f32 %v1524_v14, %v696_v32  ;;  %v1066_v35 = vpop.f32.mrb[38].mxu0  ;;  %v837_v32 = vadd.s32 32, %v1563_v19 }
 0x1f2   :  { %v699_v36 = vpop.f32.mrb[39].mxu0  ;;  %v708_v38 = vadd.f32 %v1066_v35, %v1524_v14  ;;  %v749_v40 = vmax.f32 %v705_v33, 0.0 }
 0x1f3   :  { %v747_v37 = vmax.f32 %v697_v34, 0.0  ;;  %v700_v39 = vadd.f32 %v1524_v14, %v699_v36  ;;  %vm855_vm6 = vcmp.eq.s32.totalorder %v837_v32, %v1571_v22 }
 0x1f4   :  { %v750_v43 = vmax.f32 %v708_v38, 0.0  ;;  %v772_v45 = vmul.f32 %v1531_v5, %v749_v40  ;;  %v838_v38 = vadd.s32 40, %v1563_v19 }
 0x1f5   :  { %v748_v41 = vmax.f32 %v700_v39, 0.0  ;;  %v770_v42 = vmul.f32 %v1531_v5, %v747_v37 }
 0x1f6   :  { %v773_v46 = vmul.f32 %v1531_v5, %v750_v43  ;;  %vm856_vm7 = vcmp.eq.s32.totalorder %v838_v38, %v1571_v22 }
 0x1f7   :  { %790 = vadd.xlane.f32.xlu0 %v770_v42  ;;  %v771_v44 = vmul.f32 %v1531_v5, %v748_v41 }
 0x1f9   :  { %792 = vadd.xlane.f32.xlu1 %v771_v44  ;;  %v839_v44 = vadd.s32 48, %v1563_v19 }
 0x1fb   :  { %794 = vadd.xlane.f32.xlu0 %v772_v45  ;;  %vm857_vm8 = vcmp.eq.s32.totalorder %v839_v44, %v1571_v22 }
 0x1fd   :  { %796 = vadd.xlane.f32.xlu1 %v773_v46 }
 0x1ff   :  { %v1069_v47 = vpop.f32.mrb[40].mxu0 }
 0x200   :  { %v712_v48 = vpop.f32.mrb[41].mxu0  ;;  %v721_v49 = vadd.f32 %v1069_v47, %v1524_v14 }
 0x201   :  { %v713_v50 = vadd.f32 %v1524_v14, %v712_v48  ;;  %v1070_v51 = vpop.f32.mrb[42].mxu0 }
 0x202   :  { %v715_v52 = vpop.f32.mrb[43].mxu0  ;;  %v724_v54 = vadd.f32 %v1070_v51, %v1524_v14  ;;  %v753_v56 = vmax.f32 %v721_v49, 0.0  ;;  %v840_v49 = vadd.s32 56, %v1563_v19 }
 0x203   :  { %v751_v53 = vmax.f32 %v713_v50, 0.0  ;;  %v716_v55 = vadd.f32 %v1524_v14, %v715_v52  ;;  %v841_v52 = vadd.s32 64, %v1563_v19 }
 0x204   :  { %v754_v59 = vmax.f32 %v724_v54, 0.0  ;;  %v776_v61 = vmul.f32 %v1531_v5, %v753_v56  ;;  %vm858_vm9 = vcmp.eq.s32.totalorder %v840_v49, %v1571_v22 }
 0x205   :  { %v752_v57 = vmax.f32 %v716_v55, 0.0  ;;  %v774_v58 = vmul.f32 %v1531_v5, %v751_v53  ;;  %vm859_vm10 = vcmp.eq.s32.totalorder %v841_v52, %v1571_v22 }
 0x206   :  { %v777_v62 = vmul.f32 %v1531_v5, %v754_v59 }
 0x207   :  { %798 = vadd.xlane.f32.xlu0 %v774_v58  ;;  %v775_v60 = vmul.f32 %v1531_v5, %v752_v57  ;;  %v842_v57 = vadd.s32 72, %v1563_v19 }
 0x209   :  { %800 = vadd.xlane.f32.xlu1 %v775_v60  ;;  %vm860_vm11 = vcmp.eq.s32.totalorder %v842_v57, %v1571_v22 }
 0x20b   :  { %802 = vadd.xlane.f32.xlu0 %v776_v61 }
 0x20d   :  { %804 = vadd.xlane.f32.xlu1 %v777_v62 }
 0x20f   :  { %v1073_v63 = vpop.f32.mrb[32].mxu1 }
 0x210   :  { %v728_v0 = vpop.f32.mrb[33].mxu1  ;;  %v737_v1 = vadd.f32 %v1073_v63, %v1524_v14 }
 0x211   :  { %v729_v2 = vadd.f32 %v1524_v14, %v728_v0  ;;  %v1074_v3 = vpop.f32.mrb[34].mxu1  ;;  %v843_v0 = vadd.s32 80, %v1563_v19 }
 0x212   :  { %v731_v4 = vpop.f32.mrb[35].mxu1  ;;  %v740_v7 = vadd.f32 %v1074_v3, %v1524_v14  ;;  %v757_v9 = vmax.f32 %v737_v1, 0.0 }
 0x213   :  { %v755_v6 = vmax.f32 %v729_v2, 0.0  ;;  %v732_v8 = vadd.f32 %v1524_v14, %v731_v4  ;;  %v834_v14 = vadd.s32 8, %v1563_v19  ;;  %vm861_vm12 = vcmp.eq.s32.totalorder %v843_v0, %v1571_v22 }
 0x214   :  { %v758_v12 = vmax.f32 %v740_v7, 0.0  ;;  %v780_v15 = vmul.f32 %v1531_v5, %v757_v9 }
 0x215   :  { %v756_v10 = vmax.f32 %v732_v8, 0.0  ;;  %v778_v11 = vmul.f32 %v1531_v5, %v755_v6  ;;  %vm852_vm2 = vcmp.eq.s32.totalorder %v834_v14, %v1571_v22  ;;  %v844_v6 = vadd.s32 88, %v1563_v19 }
 0x216   :  { %v781_v16 = vmul.f32 %v1531_v5, %v758_v12 }
 0x217   :  { %806 = vadd.xlane.f32.xlu0 %v778_v11  ;;  %v779_v13 = vmul.f32 %v1531_v5, %v756_v10  ;;  %vm862_vm13 = vcmp.eq.s32.totalorder %v844_v6, %v1571_v22  ;;  %v845_v11 = vadd.s32 96, %v1563_v19 }
 0x219   :  { %808 = vadd.xlane.f32.xlu1 %v779_v13  ;;  %v846_v13 = vadd.s32 104, %v1563_v19  ;;  %vm863_vm14 = vcmp.eq.s32.totalorder %v845_v11, %v1571_v22 }
 0x21b   :  { %810 = vadd.xlane.f32.xlu0 %v780_v15  ;;  %vm864_vm15 = vcmp.eq.s32.totalorder %v846_v13, %v1571_v22 }
 0x21d   :  { %812 = vadd.xlane.f32.xlu1 %v781_v16 }
 0x273   :  { %v787_v24 = vpop.xlane.xlu1 %786 }
 0x274   :  { %v783_v18 = vpop.xlane.xlu0 %782  ;;  %v818_v27 = vadd.f32 %v1569_v21, %v787_v24 }
 0x275   :  { %v816_v5 = vadd.f32 %v1569_v21, %v783_v18 }
 0x276   :  { %v869_v34 = vsel %vm853_vm4, %v818_v27, 0.0 }
 0x277   :  { %v867_v28 = vsel %vm851_vm3, %v816_v5, 0.0  ;;  %v789_v30 = vpop.xlane.xlu1 %788 }
 0x278   :  { %v785_v20 = vpop.xlane.xlu0 %784  ;;  %v819_v35 = vadd.f32 %v1569_v21, %v789_v30 }
 0x279   :  { %v817_v23 = vadd.f32 %v1569_v21, %v785_v20 }
 0x27a   :  { %v870_v40 = vsel %vm854_vm5, %v819_v35, 0.0 }
 0x27b   :  { %v868_v26 = vsel %vm852_vm2, %v817_v23, 0.0  ;;  %v848_v23 = vadd.s32 120, %v1563_v19 }
 0x27c   :  { %v883_v31 = vadd.f32 %v868_v26, %v867_v28 }
 0x27d   :  { %vm866_vm1 = vcmp.eq.s32.totalorder %v848_v23, %v1571_v22 }
 0x27e   :  { %v884_v37 = vadd.f32 %v883_v31, %v869_v34 }
 0x280   :  { %v885_v43 = vadd.f32 %v884_v37, %v870_v40 }
 0x284   :  { %v791_v33 = vpop.xlane.xlu0 %790 }
 0x285   :  { %v820_v36 = vadd.f32 %v1569_v21, %v791_v33 }
 0x286   :  { %v793_v39 = vpop.xlane.xlu1 %792 }
 0x287   :  { %v871_v41 = vsel %vm855_vm6, %v820_v36, 0.0  ;;  %v821_v42 = vadd.f32 %v1569_v21, %v793_v39 }
 0x288   :  { %v795_v45 = vpop.xlane.xlu0 %794  ;;  %v886_v46 = vadd.f32 %v885_v43, %v871_v41 }
 0x289   :  { %v872_v47 = vsel %vm856_vm7, %v821_v42, 0.0  ;;  %v822_v48 = vadd.f32 %v1569_v21, %v795_v45 }
 0x28a   :  { %v797_v50 = vpop.xlane.xlu1 %796  ;;  %v887_v51 = vadd.f32 %v886_v46, %v872_v47 }
 0x28b   :  { %v873_v53 = vsel %vm857_vm8, %v822_v48, 0.0  ;;  %v823_v54 = vadd.f32 %v1569_v21, %v797_v50 }
 0x28c   :  { %v888_v55 = vadd.f32 %v887_v51, %v873_v53 }
 0x28d   :  { %v874_v58 = vsel %vm858_vm9, %v823_v54, 0.0 }
 0x28e   :  { %v889_v63 = vadd.f32 %v888_v55, %v874_v58 }
 0x294   :  { %v799_v56 = vpop.xlane.xlu0 %798 }
 0x295   :  { %v824_v59 = vadd.f32 %v1569_v21, %v799_v56 }
 0x296   :  { %v801_v60 = vpop.xlane.xlu1 %800 }
 0x297   :  { %v875_v61 = vsel %vm859_vm10, %v824_v59, 0.0  ;;  %v825_v62 = vadd.f32 %v1569_v21, %v801_v60 }
 0x298   :  { %v803_v1 = vpop.xlane.xlu0 %802  ;;  %v890_v2 = vadd.f32 %v889_v63, %v875_v61 }
 0x299   :  { %v876_v3 = vsel %vm860_vm11, %v825_v62, 0.0  ;;  %v826_v4 = vadd.f32 %v1569_v21, %v803_v1 }
 0x29a   :  { %v805_v7 = vpop.xlane.xlu1 %804  ;;  %v891_v8 = vadd.f32 %v890_v2, %v876_v3 }
 0x29b   :  { %v877_v9 = vsel %vm861_vm12, %v826_v4, 0.0  ;;  %v827_v10 = vadd.f32 %v1569_v21, %v805_v7 }
 0x29c   :  { %v892_v12 = vadd.f32 %v891_v8, %v877_v9 }
 0x29d   :  { %v878_v15 = vsel %vm862_vm13, %v827_v10, 0.0 }
 0x29e   :  { %v893_v14 = vadd.f32 %v892_v12, %v878_v15 }
 0x2a4   :  { %v807_v16 = vpop.xlane.xlu0 %806 }
 0x2a5   :  { %v828_v18 = vadd.f32 %v1569_v21, %v807_v16 }
 0x2a6   :  { %v809_v20 = vpop.xlane.xlu1 %808 }
 0x2a7   :  { %v879_v24 = vsel %vm863_vm14, %v828_v18, 0.0  ;;  %v829_v5 = vadd.f32 %v1569_v21, %v809_v20 }
 0x2a8   :  { %v894_v25 = vadd.f32 %v893_v14, %v879_v24  ;;  %v811_v26 = vpop.xlane.xlu0 %810 }
 0x2a9   :  { %v880_v27 = vsel %vm864_vm15, %v829_v5, 0.0  ;;  %v830_v28 = vadd.f32 %v1569_v21, %v811_v26 }
 0x2aa   :  { %v895_v29 = vadd.f32 %v894_v25, %v880_v27  ;;  %v813_v30 = vpop.xlane.xlu1 %812 }
 0x2ab   :  { %v881_v31 = vsel %vm865_vm0, %v830_v28, 0.0  ;;  %v831_v32 = vadd.f32 %v1569_v21, %v813_v30 }
 0x2ac   :  { %v896_v33 = vadd.f32 %v895_v29, %v881_v31 }
 0x2ad   :  { %v882_v34 = vsel %vm866_vm1, %v831_v32, 0.0 }
 0x2ae   :  { %v897_v19 = vadd.f32 %v896_v33, %v882_v34 }
 0x2b0   :  { %v898_v35 = vrot.slane %v897_v19, 4 }
 0x2b2   :  { %v899_v36 = vadd.f32 %v898_v35, %v897_v19 }
 0x2b4   :  { %v900_v37 = vrot.slane %v899_v36, 2 }
 0x2b6   :  { %v901_v38 = vadd.f32 %v900_v37, %v899_v36 }
 0x2b8   :  { %v902_v39 = vrot.slane %v901_v38, 1 }
 0x2ba   :  { %v903_v40 = vadd.f32 %v902_v39, %v901_v38 }
 0x2bc   :  { %904 = vst [vmem:[#allocation3] sm:$0x1] %v903_v40 }
 0x2bd   :  { %1137 = shalt.err (!%p1134_p4)
}
 0x2be   :  { %s1138_s13 = scalar_lea.hbm %s1639_s7, 16 }
 0x2bf   :  { %p1139_p5 = scmp.ne.s32.totalorder %s1639_s7, %s1138_s13  ;;  %p1142_p6 = scmp.lt.u32.totalorder %s1138_s13, %s1639_s7 }
 0x2c1   :  { %p1144_p7 = pnand %p1142_p6, %p1139_p5 }
 0x2c3   :  { %1147 = shalt.err (!%p1144_p7)
}
 0x2c4   :  { %914 = dma.vmem_to_hbm [thread:$0]  %s912_s8, 16, %s1639_s7, [#allocation4]  }
 0x2c5   :  { %1148 = dma.done.wait [#allocation4], 16  }
 0x2c6   :  { %1149 = vsyncadd [#allocation4], 4294967280 }
 0x2c7   :  { %918 = vsyncpa [#allocation4], 1 }

</bundles_post_ra>
